<compile_context>
chip_gen: v5e
topology: v5e:2x2
jax: 0.10.0
libtpu: 0.0.40
codegen_flags: <defaults>
</compile_context>

<pallas_src>
import functools

import jax
import jax.numpy as jnp
from jax.experimental import pallas as pl
from jax.experimental.pallas import tpu as pltpu


def _round_up(a: int, b: int) -> int:
    return (a + b - 1) // b * b


def _patch_embed_kernel(xp_ref, w_ref, b_ref, o_ref):
    # xp_ref: (1, n_patches, K)  flattened patches of one batch image
    # w_ref : (K, tn)            projection weight (resident across batch sweep)
    # b_ref : (1, tn)            bias, f32 (resident)
    # o_ref : (1, n_patches, tn) output tile
    acc = jnp.dot(xp_ref[0], w_ref[...], preferred_element_type=jnp.float32)
    o_ref[0] = (acc + b_ref[...]).astype(o_ref.dtype)


def patch_embedding(x, weight, bias, patch_size, *, compute_dtype=None,
                    vmem_limit_bytes=32 * 1024 * 1024):
    """x: (B, C, H, W), weight: (E, C, P, P), bias: (E,) -> (B, n_patches, E)."""
    B, C, H, W = x.shape
    E = weight.shape[0]
    P = patch_size
    hp, wp = H // P, W // P
    n_patches = hp * wp
    K = C * P * P

    in_dtype = jnp.dtype(compute_dtype) if compute_dtype is not None else x.dtype
    out_dtype = x.dtype
    in_bytes = jnp.dtype(in_dtype).itemsize
    out_bytes = jnp.dtype(out_dtype).itemsize

    # --- glue: im2col, materialized ONCE in the compute dtype ---------------
    # Cast BEFORE the 6-D transpose so the activations cross HBM already
    # narrow; K is left unpadded (50 for the JEPA encoder) — no pad pass.
    # Crop to hp*P x wp*P first (stride-P conv floor semantics).
    # TODO(synk): fold the patch extraction into the kernel DMA (grid over
    # (batch, patch-row) with an in-kernel reshuffle) so the whole op is a
    # single HBM pass; kept as one fused XLA copy here for lowering robustness.
    xs = x[:, :, :hp * P, :wp * P].astype(in_dtype)
    xp = xs.reshape(B, C, hp, P, wp, P).transpose(0, 2, 4, 1, 3, 5)
    xp = xp.reshape(B, n_patches, K)

    w = weight.reshape(E, K).T.astype(in_dtype)        # (K, E): conv sums over (C, kh, kw)
    b = bias.reshape(1, E).astype(jnp.float32)

    # --- N tiling: lane-dense output stores, weight fully resident ----------
    Np = _round_up(E, 128)
    if Np != E:
        w = jnp.pad(w, ((0, 0), (0, Np - E)))
        b = jnp.pad(b, ((0, 0), (0, Np - E)))

    tn = Np
    if K * Np * in_bytes > 2 * 1024 * 1024:            # huge E: tile N
        for cand in (512, 256, 128):                   # no 384 (256-wide MXU on v6e/v7x)
            if Np % cand == 0:
                tn = cand
                break
    gn = Np // tn

    # Per-step double-buffered VMEM footprint (<< limit for ViT-sized shapes).
    step_vmem = (2 * n_patches * K * in_bytes          # activation blocks
                 + 2 * K * tn * in_bytes               # weight block
                 + 2 * tn * 4                          # bias block
                 + 2 * n_patches * tn * out_bytes)     # output blocks
    if step_vmem > vmem_limit_bytes:
        # TODO(synk): tile the n_patches axis for very large images.
        raise ValueError(f"patch block too large for VMEM: {step_vmem} bytes")

    cost = pl.CostEstimate(
        flops=2 * B * n_patches * K * Np,
        transcendentals=0,
        bytes_accessed=(B * n_patches * K * in_bytes + K * Np * in_bytes
                        + Np * 4 + B * n_patches * Np * out_bytes),
    )

    # Grid: N-tile axis OUTER (usually size 1), batch INNER.  With j outer the
    # weight/bias block index is constant across the whole batch sweep, so the
    # projection matrix is DMA'd exactly gn (==1 here) times.  The batch axis
    # provides >= 2 parallel steps for v7x megacore when B >= 2.
    out = pl.pallas_call(
        _patch_embed_kernel,
        out_shape=jax.ShapeDtypeStruct((B, n_patches, Np), out_dtype),
        grid_spec=pltpu.PrefetchScalarGridSpec(
            num_scalar_prefetch=0,
            grid=(gn, B),
            in_specs=[
                pl.BlockSpec((1, n_patches, K), lambda j, bb: (bb, 0, 0)),
                pl.BlockSpec((K, tn), lambda j, bb: (0, j)),
                pl.BlockSpec((1, tn), lambda j, bb: (0, j)),
            ],
            out_specs=pl.BlockSpec((1, n_patches, tn), lambda j, bb: (bb, 0, j)),
        ),
        compiler_params=pltpu.CompilerParams(
            dimension_semantics=("parallel", "parallel"),
            vmem_limit_bytes=vmem_limit_bytes,
        ),
        cost_estimate=cost,
    )(xp, w, b)

    if Np != E:                                        # only when E % 128 != 0
        out = out[:, :, :E]
    return out


if __name__ == "__main__":
    # Shapes consistent with the JEPA ViTBackbone: image_size=65, patch_size=5,
    # in_channels=2, embed_dim=256; small batch of 2.
    B, C, IMG, P, E = 2, 2, 65, 5, 256
    hp = IMG // P
    n_patches = hp * hp

    key = jax.random.PRNGKey(0)
    kx, kw, kb = jax.random.split(key, 3)
    x = jax.random.normal(kx, (B, C, IMG, IMG), dtype=jnp.float32)
    # Deterministic synthetic parameters (conv_proj weight/bias shapes).
    weight = jax.random.normal(kw, (E, C, P, P), dtype=jnp.float32) * 0.02
    bias = jax.random.normal(kb, (E,), dtype=jnp.float32) * 0.02

    # Reference: stride-P conv via patch extraction + einsum in plain JAX.
    xp_ref = x.reshape(B, C, hp, P, hp, P).transpose(0, 2, 4, 1, 3, 5)
    xp_ref = xp_ref.reshape(B, n_patches, C * P * P)
    ref = jnp.einsum("bpk,ek->bpe", xp_ref, weight.reshape(E, -1),
                     precision=jax.lax.Precision.HIGHEST) + bias

    # f32 operand path.
    f32_fn = jax.jit(functools.partial(patch_embedding, patch_size=P,
                                       compute_dtype=jnp.float32))
    out_f32 = jax.block_until_ready(f32_fn(x, weight, bias))
    assert out_f32.shape == (B, n_patches, E), out_f32.shape
    assert jnp.allclose(out_f32, ref, atol=2e-3, rtol=2e-3), float(
        jnp.max(jnp.abs(out_f32 - ref)))

    # bf16 MXU path (what you would run at scale), f32 accumulate/bias.
    bf16_fn = jax.jit(functools.partial(patch_embedding, patch_size=P,
                                        compute_dtype=jnp.bfloat16))
    out_bf16 = jax.block_until_ready(bf16_fn(x, weight, bias))
    assert out_bf16.shape == (B, n_patches, E), out_bf16.shape
    assert jnp.allclose(out_bf16.astype(jnp.float32), ref, atol=2e-2, rtol=2e-2), float(
        jnp.max(jnp.abs(out_bf16.astype(jnp.float32) - ref)))

    print("KERNEL_OK")
</pallas_src>

<mosaic_0001>
module attributes {stable_mosaic.version = 11 : i64} {
  func.func @_patch_embed_kernel(%arg0: i32, %arg1: i32, %arg2: memref<1x169x50xf32, #tpu.memory_space<vmem>>, %arg3: memref<50x256xf32, #tpu.memory_space<vmem>>, %arg4: memref<1x256xf32, #tpu.memory_space<vmem>>, %arg5: memref<1x169x256xf32, #tpu.memory_space<vmem>>) attributes {dimension_semantics = [#tpu.dimension_semantics<parallel>, #tpu.dimension_semantics<parallel>], iteration_bounds = array<i64: 1, 2>, scalar_prefetch = 0 : i64, scratch_operands = 0 : i64, tpu.core_type = #tpu.core_type<tc>, window_params = [{transform_indices = @transform_0, window_bounds = array<i64: 1, 169, 50>}, {transform_indices = @transform_1, window_bounds = array<i64: 50, 256>}, {transform_indices = @transform_2, window_bounds = array<i64: 1, 256>}, {transform_indices = @transform_3, window_bounds = array<i64: 1, 169, 256>}]} {
    %c0 = arith.constant 0 : index
    %c0_0 = arith.constant 0 : index
    %c0_1 = arith.constant 0 : index
    %0 = vector.load %arg2[%c0, %c0_0, %c0_1] : memref<1x169x50xf32, #tpu.memory_space<vmem>>, vector<1x169x50xf32>
    %1 = vector.shape_cast %0 : vector<1x169x50xf32> to vector<169x50xf32>
    %c0_2 = arith.constant 0 : index
    %c0_3 = arith.constant 0 : index
    %2 = vector.load %arg3[%c0_2, %c0_3] : memref<50x256xf32, #tpu.memory_space<vmem>>, vector<50x256xf32>
    %cst = arith.constant dense<0.000000e+00> : vector<169x256xf32>
    %3 = tpu.matmul %1, %2, %cst {dimension_numbers = #tpu.dot_dimension_numbers<[1], [0], [0], [1], [0, 0, 1, 1], [], []>} : vector<169x50xf32>, vector<50x256xf32>, vector<169x256xf32> -> vector<169x256xf32>
    %c0_4 = arith.constant 0 : index
    %c0_5 = arith.constant 0 : index
    %4 = vector.load %arg4[%c0_4, %c0_5] : memref<1x256xf32, #tpu.memory_space<vmem>>, vector<1x256xf32>
    %5 = vector.broadcast %4 : vector<1x256xf32> to vector<169x256xf32>
    %6 = arith.addf %3, %5 : vector<169x256xf32>
    %c0_6 = arith.constant 0 : index
    %c0_7 = arith.constant 0 : index
    %c0_8 = arith.constant 0 : index
    %7 = vector.load %arg5[%c0_6, %c0_7, %c0_8] : memref<1x169x256xf32, #tpu.memory_space<vmem>>, vector<1x169x256xf32>
    %8 = vector.shape_cast %7 : vector<1x169x256xf32> to vector<169x256xf32>
    %9 = vector.shape_cast %6 : vector<169x256xf32> to vector<1x169x256xf32>
    tpu.vector_store %arg5[%c0_6, %c0_7, %c0_8], %9 {strides = array<i32>} : memref<1x169x256xf32, #tpu.memory_space<vmem>>, vector<1x169x256xf32>,
    return
  }
  func.func @transform_0(%arg0: i32, %arg1: i32) -> (i32, i32, i32) {
    %c0_i32 = arith.constant 0 : i32
    %c0_i32_0 = arith.constant 0 : i32
    %c0_i32_1 = arith.constant 0 : i32
    return %arg1, %c0_i32, %c0_i32_0 : i32, i32, i32
  }
  func.func @transform_1(%arg0: i32, %arg1: i32) -> (i32, i32) {
    %c0_i32 = arith.constant 0 : i32
    %c0_i32_0 = arith.constant 0 : i32
    return %c0_i32, %arg0 : i32, i32
  }
  func.func @transform_2(%arg0: i32, %arg1: i32) -> (i32, i32) {
    %c0_i32 = arith.constant 0 : i32
    %c0_i32_0 = arith.constant 0 : i32
    return %c0_i32, %arg0 : i32, i32
  }
  func.func @transform_3(%arg0: i32, %arg1: i32) -> (i32, i32, i32) {
    %c0_i32 = arith.constant 0 : i32
    %c0_i32_0 = arith.constant 0 : i32
    return %arg1, %c0_i32, %arg0 : i32, i32, i32
  }
}

</mosaic_0001>

<bundles_post_ra>
// kernel: patch_embedding.1
= control target key start
LH: loop header
LB: loop body
LE: loop exit
PB: predicated region body
PF: predicated region fallthrough
CT: control target
= control target key end

     0   :  { %s810_s12 = smov 0   ;;  %s812_s13 = smov 0   ;;  %s1054_s0 = inlined_call_operand.vmem [shape: f32[2,169,50], index: 0, kind: input, shape index: {}]   ;;  %s1055_s1 = inlined_call_operand.vmem [shape: f32[50,256], index: 1, kind: input, shape index: {}]   ;;  %s1056_s2 = inlined_call_operand.vmem [shape: f32[1,256], index: 2, kind: input, shape index: {}]   ;;  %s1057_s3 = inlined_call_operand.vmem [shape: f32[2,169,256], index: 3, kind: output, shape index: {}]  }
   0x1   :  { %s814_s14 = smov 0  }
   0x2 LB: > { %s22_s15 = sadd.s32 1, %s784_s13  ;;  %p675_p0 = scmp.ge.s32.totalorder %s788_s14, 1  ;;  %s788_s14 = sphi %s814_s14, %s13_s14   ;;  %s784_s13 = sphi %s812_s13, %s1059_s13   ;;  %s780_s12 = sphi %s810_s12, %s1058_s12  }
   0x3   : > { %p23_p1 = scmp.ge.s32.totalorder %s22_s15, 2  ;;  %p172_p2 = scmp.lt.s32.totalorder %s788_s14, 3 }
   0x5   : > { %s1061_s15 = smov (%p23_p1, %s22_s15), 0  ;;  %p173_p3 = pnand %p675_p0, %p172_p2 }
   0x6   : > { %p209_p4 = scmp.lt.s32.totalorder (!%p173_p3), %s780_s12, 1 }
   0x7   : > { %176 = sbr.rel (%p173_p3) target bundleno = 242 (0xf2), region = 32 }
   0xc   : > { %v269_v0 = vld [vmem:[%s1055_s1 + $0x60] sm:$0x3]  ;;  %vm344_vm0 = vcmask 1041408   ;;  %v270_v1 = vld [vmem:[%s1055_s1 + $0x68] sm:$0x3]  ;;  %v267_v2 = vld [vmem:[%s1055_s1 + $0x50] sm:$0xff] }
   0xd   : > { %726 = vmatpush.msk.msra.mxu2 %vm344_vm0, %v269_v0  ;;  %733 = vmatpush.msk.msra.mxu3 %vm344_vm0, %v270_v1  ;;  %v268_v3 = vld [vmem:[%s1055_s1 + $0x58] sm:$0xff]  ;;  %v265_v4 = vld [vmem:[%s1055_s1 + $0x40] sm:$0xff]  ;;  %v266_v5 = vld [vmem:[%s1055_s1 + $0x48] sm:$0xff]  ;;  %s1063_s12 = smov (!%p209_p4, %s780_s12), 1  ;;  %vm277_vm1 = vcmask 408576  }
   0xe   : > { %678 = vmatpush.msk.msra.mxu0 %vm344_vm0, %v269_v0  ;;  %701 = vmatpush.msk.msra.mxu1 %vm344_vm0, %v270_v1  ;;  %v263_v6 = vld [vmem:[%s1055_s1 + $0x30] sm:$0xff]  ;;  %v264_v7 = vld [vmem:[%s1055_s1 + $0x38] sm:$0xff]  ;;  %s740_s5 = smul.u32 176, %s1063_s12  ;;  %v261_v8 = vld [vmem:[%s1055_s1 + $0x20] sm:$0xff] }
   0xf   : > { %727 = vmatpush.msra.mxu2 %v267_v2  ;;  %734 = vmatpush.msra.mxu3 %v268_v3  ;;  %v262_v9 = vld [vmem:[%s1055_s1 + $0x28] sm:$0xff]  ;;  %v259_v10 = vld [vmem:[%s1055_s1 + $0x10] sm:$0xff]  ;;  %v260_v11 = vld [vmem:[%s1055_s1 + $0x18] sm:$0xff]  ;;  %s741_s27 = smul.u32 352, %s1063_s12 }
  0x10   : > { %361 = vmatpush.msra.mxu0 %v267_v2  ;;  %444 = vmatpush.msra.mxu1 %v268_v3  ;;  %s870_s20 = scalar_lea.vmem %s1054_s0, %s740_s5  ;;  %v257_v12 = vld [vmem:[%s1055_s1] sm:$0xff]  ;;  %v258_v13 = vld [vmem:[%s1055_s1 + $0x8] sm:$0xff] }
  0x11   : > { %728 = vmatpush.msra.mxu2 %v265_v4  ;;  %735 = vmatpush.msra.mxu3 %v266_v5  ;;  %v246_v14 = vld [vmem:[%s870_s20 + $0x58] sm:$0xff]  ;;  %v235_v15 = vld [vmem:[%s870_s20] sm:$0xff]  ;;  %v236_v17 = vld [vmem:[%s870_s20 + $0x8] sm:$0xff]  ;;  %s955_s30 = scalar_lea.vmem %s1057_s3, %s741_s27 }
  0x12   : > { %362 = vmatpush.msra.mxu0 %v265_v4  ;;  %445 = vmatpush.msra.mxu1 %v266_v5  ;;  %v247_v16 = vld [vmem:[%s870_s20 + $0x60] sm:$0xff]  ;;  %v248_v18 = vld [vmem:[%s870_s20 + $0x68] sm:$0xff]  ;;  %v237_v19 = vld [vmem:[%s870_s20 + $0x10] sm:$0xff] }
  0x13   : > { %729 = vmatpush.msra.mxu2 %v263_v6  ;;  %736 = vmatpush.msra.mxu3 %v264_v7  ;;  %v249_v20 = vld [vmem:[%s870_s20 + $0x70] sm:$0xff]  ;;  %v238_v21 = vld [vmem:[%s870_s20 + $0x18] sm:$0xff]  ;;  %v239_v23 = vld [vmem:[%s870_s20 + $0x20] sm:$0xff] }
  0x14   : > { %363 = vmatpush.msra.mxu0 %v263_v6  ;;  %446 = vmatpush.msra.mxu1 %v264_v7  ;;  %v250_v22 = vld [vmem:[%s870_s20 + $0x78] sm:$0xff]  ;;  %v251_v24 = vld [vmem:[%s870_s20 + $0x80] sm:$0xff]  ;;  %v240_v25 = vld [vmem:[%s870_s20 + $0x28] sm:$0xff] }
  0x15   : > { %730 = vmatpush.msra.mxu2 %v261_v8  ;;  %737 = vmatpush.msra.mxu3 %v262_v9  ;;  %v252_v26 = vld [vmem:[%s870_s20 + $0x88] sm:$0xff]  ;;  %v241_v27 = vld [vmem:[%s870_s20 + $0x30] sm:$0xff]  ;;  %v242_v29 = vld [vmem:[%s870_s20 + $0x38] sm:$0xff] }
  0x16   : > { %364 = vmatpush.msra.mxu0 %v261_v8  ;;  %447 = vmatpush.msra.mxu1 %v262_v9  ;;  %v253_v28 = vld [vmem:[%s870_s20 + $0x90] sm:$0xff]  ;;  %v254_v30 = vld [vmem:[%s870_s20 + $0x98] sm:$0xff]  ;;  %v243_v31 = vld [vmem:[%s870_s20 + $0x40] sm:$0xff] }
  0x17   : > { %731 = vmatpush.msra.mxu2 %v259_v10  ;;  %738 = vmatpush.msra.mxu3 %v260_v11  ;;  %v255_v32 = vld [vmem:[%s870_s20 + $0xa0] sm:$0xff]  ;;  %v244_v33 = vld [vmem:[%s870_s20 + $0x48] sm:$0xff]  ;;  %v245_v35 = vld [vmem:[%s870_s20 + $0x50] sm:$0xff] }
  0x18   : > { %365 = vmatpush.msra.mxu0 %v259_v10  ;;  %448 = vmatpush.msra.mxu1 %v260_v11  ;;  %v256_v34 = vld [vmem:[%s870_s20 + $0xa8] sm:$0x1]  ;;  %v271_v36 = vld [vmem:[%s1056_s2] sm:$0x3] }
  0x19   : > { %732 = vmatpush.msra.mxu2 %v257_v12  ;;  %739 = vmatpush.msra.mxu3 %v258_v13  ;;  %v948_v37 = vperm.slane %v271_v36, 0  ;;  %v950_v38 = vperm.slane %v271_v36, 1 }
  0x1a   : > { %690 = vmatmul.msk.f32.vlgmr.msra.gmra.mxu2 %vm277_vm1, %v246_v14  ;;  %713 = vmatmul.msk.f32.vlgmr.msra.gmra.mxu3 %vm277_vm1, %v246_v14 }
  0x1b   : > { %366 = vmatpush.msra.mxu0 %v257_v12  ;;  %449 = vmatpush.msra.mxu1 %v258_v13 }
  0x1c   : > { %679 = vmatmul.msk.f32.vlgmr.msra.gmra.mxu0 %vm277_vm1, %v235_v15  ;;  %702 = vmatmul.msk.f32.vlgmr.msra.gmra.mxu1 %vm277_vm1, %v235_v15 }
  0x22   : > { %691 = vmatmul.msk.f32.gmra.mxu2 %vm277_vm1, %v247_v16  ;;  %714 = vmatmul.msk.f32.gmra.mxu3 %vm277_vm1, %v247_v16 }
  0x24   : > { %680 = vmatmul.msk.f32.gmra.mxu0 %vm277_vm1, %v236_v17  ;;  %703 = vmatmul.msk.f32.gmra.mxu1 %vm277_vm1, %v236_v17 }
  0x2a   : > { %692 = vmatmul.msk.f32.gmra.mxu2 %vm277_vm1, %v248_v18  ;;  %715 = vmatmul.msk.f32.gmra.mxu3 %vm277_vm1, %v248_v18 }
  0x2c   : > { %681 = vmatmul.msk.f32.gmra.mxu0 %vm277_vm1, %v237_v19  ;;  %704 = vmatmul.msk.f32.gmra.mxu1 %vm277_vm1, %v237_v19 }
  0x32   : > { %693 = vmatmul.msk.f32.gmra.mxu2 %vm277_vm1, %v249_v20  ;;  %716 = vmatmul.msk.f32.gmra.mxu3 %vm277_vm1, %v249_v20 }
  0x34   : > { %682 = vmatmul.msk.f32.gmra.mxu0 %vm277_vm1, %v238_v21  ;;  %705 = vmatmul.msk.f32.gmra.mxu1 %vm277_vm1, %v238_v21 }
  0x3a   : > { %694 = vmatmul.msk.f32.gmra.mxu2 %vm277_vm1, %v250_v22  ;;  %717 = vmatmul.msk.f32.gmra.mxu3 %vm277_vm1, %v250_v22 }
  0x3c   : > { %683 = vmatmul.msk.f32.gmra.mxu0 %vm277_vm1, %v239_v23  ;;  %706 = vmatmul.msk.f32.gmra.mxu1 %vm277_vm1, %v239_v23 }
  0x42   : > { %695 = vmatmul.msk.f32.gmra.mxu2 %vm277_vm1, %v251_v24  ;;  %718 = vmatmul.msk.f32.gmra.mxu3 %vm277_vm1, %v251_v24 }
  0x44   : > { %684 = vmatmul.msk.f32.gmra.mxu0 %vm277_vm1, %v240_v25  ;;  %707 = vmatmul.msk.f32.gmra.mxu1 %vm277_vm1, %v240_v25 }
  0x4a   : > { %696 = vmatmul.msk.f32.gmra.mxu2 %vm277_vm1, %v252_v26  ;;  %719 = vmatmul.msk.f32.gmra.mxu3 %vm277_vm1, %v252_v26 }
  0x4c   : > { %685 = vmatmul.msk.f32.gmra.mxu0 %vm277_vm1, %v241_v27  ;;  %708 = vmatmul.msk.f32.gmra.mxu1 %vm277_vm1, %v241_v27 }
  0x52   : > { %697 = vmatmul.msk.f32.gmra.mxu2 %vm277_vm1, %v253_v28  ;;  %720 = vmatmul.msk.f32.gmra.mxu3 %vm277_vm1, %v253_v28 }
  0x54   : > { %686 = vmatmul.msk.f32.gmra.mxu0 %vm277_vm1, %v242_v29  ;;  %709 = vmatmul.msk.f32.gmra.mxu1 %vm277_vm1, %v242_v29 }
  0x5a   : > { %698 = vmatmul.msk.f32.gmra.mxu2 %vm277_vm1, %v254_v30  ;;  %721 = vmatmul.msk.f32.gmra.mxu3 %vm277_vm1, %v254_v30 }
  0x5c   : > { %687 = vmatmul.msk.f32.gmra.mxu0 %vm277_vm1, %v243_v31  ;;  %710 = vmatmul.msk.f32.gmra.mxu1 %vm277_vm1, %v243_v31 }
  0x62   : > { %699 = vmatmul.msk.f32.gmra.mxu2 %vm277_vm1, %v255_v32  ;;  %722 = vmatmul.msk.f32.gmra.mxu3 %vm277_vm1, %v255_v32 }
  0x64   : > { %688 = vmatmul.msk.f32.gmra.mxu0 %vm277_vm1, %v244_v33  ;;  %711 = vmatmul.msk.f32.gmra.mxu1 %vm277_vm1, %v244_v33 }
  0x6a   : > { %700 = vmatmul.msk.f32.gmra.mxu2 %vm277_vm1, %v256_v34  ;;  %723 = vmatmul.msk.f32.gmra.mxu3 %vm277_vm1, %v256_v34 }
  0x6c   : > { %689 = vmatmul.msk.f32.gmra.mxu0 %vm277_vm1, %v245_v35  ;;  %712 = vmatmul.msk.f32.gmra.mxu1 %vm277_vm1, %v245_v35 }
  0x99   : > { %v368_v39 = vpop.f32.mrf.mxu0  ;;  %v451_v40 = vpop.f32.mrf.mxu1 }
  0x9a   : > { %v369_v41 = vadd.f32 %v368_v39, %v948_v37  ;;  %v452_v42 = vadd.f32 %v451_v40, %v950_v38 }
  0x9c   : > { %517 = vst [vmem:[%s955_s30] sm:$0xff] %v369_v41 }
  0x9d   : > { %v401_v43 = vpop.f32.mrf.mxu2  ;;  %518 = vst [vmem:[%s955_s30 + $0x8] sm:$0xff] %v452_v42  ;;  %v484_v44 = vpop.f32.mrf.mxu3 }
  0x9e   : > { %v402_v45 = vadd.f32 %v401_v43, %v948_v37  ;;  %v485_v46 = vadd.f32 %v484_v44, %v950_v38 }
  0xa0   : > { %539 = vst [vmem:[%s955_s30 + $0xb0] sm:$0xff] %v402_v45 }
  0xa1   : > { %540 = vst [vmem:[%s955_s30 + $0xb8] sm:$0xff] %v485_v46  ;;  %v371_v47 = vpop.f32.mrf.mxu0  ;;  %v454_v48 = vpop.f32.mrf.mxu1 }
  0xa2   : > { %v372_v49 = vadd.f32 %v371_v47, %v948_v37  ;;  %v455_v50 = vadd.f32 %v454_v48, %v950_v38 }
  0xa4   : > { %519 = vst [vmem:[%s955_s30 + $0x10] sm:$0xff] %v372_v49 }
  0xa5   : > { %v404_v51 = vpop.f32.mrf.mxu2  ;;  %520 = vst [vmem:[%s955_s30 + $0x18] sm:$0xff] %v455_v50  ;;  %v487_v52 = vpop.f32.mrf.mxu3 }
  0xa6   : > { %v405_v53 = vadd.f32 %v404_v51, %v948_v37  ;;  %v488_v54 = vadd.f32 %v487_v52, %v950_v38 }
  0xa8   : > { %541 = vst [vmem:[%s955_s30 + $0xc0] sm:$0xff] %v405_v53 }
  0xa9   : > { %542 = vst [vmem:[%s955_s30 + $0xc8] sm:$0xff] %v488_v54  ;;  %v374_v55 = vpop.f32.mrf.mxu0  ;;  %v457_v56 = vpop.f32.mrf.mxu1 }
  0xaa   : > { %v375_v57 = vadd.f32 %v374_v55, %v948_v37  ;;  %v458_v58 = vadd.f32 %v457_v56, %v950_v38 }
  0xac   : > { %521 = vst [vmem:[%s955_s30 + $0x20] sm:$0xff] %v375_v57 }
  0xad   : > { %v407_v59 = vpop.f32.mrf.mxu2  ;;  %522 = vst [vmem:[%s955_s30 + $0x28] sm:$0xff] %v458_v58  ;;  %v490_v60 = vpop.f32.mrf.mxu3 }
  0xae   : > { %v408_v61 = vadd.f32 %v407_v59, %v948_v37  ;;  %v491_v62 = vadd.f32 %v490_v60, %v950_v38 }
  0xb0   : > { %543 = vst [vmem:[%s955_s30 + $0xd0] sm:$0xff] %v408_v61 }
  0xb1   : > { %544 = vst [vmem:[%s955_s30 + $0xd8] sm:$0xff] %v491_v62  ;;  %v377_v63 = vpop.f32.mrf.mxu0  ;;  %v460_v0 = vpop.f32.mrf.mxu1 }
  0xb2   : > { %v378_v1 = vadd.f32 %v377_v63, %v948_v37  ;;  %v461_v2 = vadd.f32 %v460_v0, %v950_v38 }
  0xb4   : > { %523 = vst [vmem:[%s955_s30 + $0x30] sm:$0xff] %v378_v1 }
  0xb5   : > { %v410_v3 = vpop.f32.mrf.mxu2  ;;  %524 = vst [vmem:[%s955_s30 + $0x38] sm:$0xff] %v461_v2  ;;  %v493_v4 = vpop.f32.mrf.mxu3 }
  0xb6   : > { %v411_v5 = vadd.f32 %v410_v3, %v948_v37  ;;  %v494_v6 = vadd.f32 %v493_v4, %v950_v38 }
  0xb8   : > { %545 = vst [vmem:[%s955_s30 + $0xe0] sm:$0xff] %v411_v5 }
  0xb9   : > { %546 = vst [vmem:[%s955_s30 + $0xe8] sm:$0xff] %v494_v6  ;;  %v380_v7 = vpop.f32.mrf.mxu0  ;;  %v463_v8 = vpop.f32.mrf.mxu1 }
  0xba   : > { %v381_v9 = vadd.f32 %v380_v7, %v948_v37  ;;  %v464_v10 = vadd.f32 %v463_v8, %v950_v38 }
  0xbc   : > { %525 = vst [vmem:[%s955_s30 + $0x40] sm:$0xff] %v381_v9 }
  0xbd   : > { %v413_v11 = vpop.f32.mrf.mxu2  ;;  %526 = vst [vmem:[%s955_s30 + $0x48] sm:$0xff] %v464_v10  ;;  %v496_v12 = vpop.f32.mrf.mxu3 }
  0xbe   : > { %v414_v13 = vadd.f32 %v413_v11, %v948_v37  ;;  %v497_v14 = vadd.f32 %v496_v12, %v950_v38 }
  0xc0   : > { %547 = vst [vmem:[%s955_s30 + $0xf0] sm:$0xff] %v414_v13 }
  0xc1   : > { %548 = vst [vmem:[%s955_s30 + $0xf8] sm:$0xff] %v497_v14  ;;  %v383_v15 = vpop.f32.mrf.mxu0  ;;  %v466_v16 = vpop.f32.mrf.mxu1 }
  0xc2   : > { %v384_v17 = vadd.f32 %v383_v15, %v948_v37  ;;  %v467_v18 = vadd.f32 %v466_v16, %v950_v38 }
  0xc4   : > { %527 = vst [vmem:[%s955_s30 + $0x50] sm:$0xff] %v384_v17 }
  0xc5   : > { %v416_v19 = vpop.f32.mrf.mxu2  ;;  %528 = vst [vmem:[%s955_s30 + $0x58] sm:$0xff] %v467_v18  ;;  %v499_v20 = vpop.f32.mrf.mxu3 }
  0xc6   : > { %v417_v21 = vadd.f32 %v416_v19, %v948_v37  ;;  %v500_v22 = vadd.f32 %v499_v20, %v950_v38 }
  0xc8   : > { %549 = vst [vmem:[%s955_s30 + $0x100] sm:$0xff] %v417_v21 }
  0xc9   : > { %550 = vst [vmem:[%s955_s30 + $0x108] sm:$0xff] %v500_v22  ;;  %v386_v23 = vpop.f32.mrf.mxu0  ;;  %v469_v24 = vpop.f32.mrf.mxu1 }
  0xca   : > { %v387_v25 = vadd.f32 %v386_v23, %v948_v37  ;;  %v470_v26 = vadd.f32 %v469_v24, %v950_v38 }
  0xcc   : > { %529 = vst [vmem:[%s955_s30 + $0x60] sm:$0xff] %v387_v25 }
  0xcd   : > { %v419_v27 = vpop.f32.mrf.mxu2  ;;  %530 = vst [vmem:[%s955_s30 + $0x68] sm:$0xff] %v470_v26  ;;  %v502_v28 = vpop.f32.mrf.mxu3 }
  0xce   : > { %v420_v29 = vadd.f32 %v419_v27, %v948_v37  ;;  %v503_v30 = vadd.f32 %v502_v28, %v950_v38 }
  0xd0   : > { %551 = vst [vmem:[%s955_s30 + $0x110] sm:$0xff] %v420_v29 }
  0xd1   : > { %552 = vst [vmem:[%s955_s30 + $0x118] sm:$0xff] %v503_v30  ;;  %v389_v31 = vpop.f32.mrf.mxu0  ;;  %v472_v32 = vpop.f32.mrf.mxu1 }
  0xd2   : > { %v390_v33 = vadd.f32 %v389_v31, %v948_v37  ;;  %v473_v34 = vadd.f32 %v472_v32, %v950_v38 }
  0xd4   : > { %531 = vst [vmem:[%s955_s30 + $0x70] sm:$0xff] %v390_v33 }
  0xd5   : > { %v422_v35 = vpop.f32.mrf.mxu2  ;;  %532 = vst [vmem:[%s955_s30 + $0x78] sm:$0xff] %v473_v34  ;;  %v505_v36 = vpop.f32.mrf.mxu3 }
  0xd6   : > { %v423_v39 = vadd.f32 %v422_v35, %v948_v37  ;;  %v506_v40 = vadd.f32 %v505_v36, %v950_v38 }
  0xd8   : > { %553 = vst [vmem:[%s955_s30 + $0x120] sm:$0xff] %v423_v39 }
  0xd9   : > { %554 = vst [vmem:[%s955_s30 + $0x128] sm:$0xff] %v506_v40  ;;  %v392_v41 = vpop.f32.mrf.mxu0  ;;  %v475_v42 = vpop.f32.mrf.mxu1 }
  0xda   : > { %v393_v43 = vadd.f32 %v392_v41, %v948_v37  ;;  %v476_v44 = vadd.f32 %v475_v42, %v950_v38 }
  0xdc   : > { %533 = vst [vmem:[%s955_s30 + $0x80] sm:$0xff] %v393_v43 }
  0xdd   : > { %v425_v45 = vpop.f32.mrf.mxu2  ;;  %534 = vst [vmem:[%s955_s30 + $0x88] sm:$0xff] %v476_v44  ;;  %v508_v46 = vpop.f32.mrf.mxu3 }
  0xde   : > { %v426_v47 = vadd.f32 %v425_v45, %v948_v37  ;;  %v509_v48 = vadd.f32 %v508_v46, %v950_v38 }
  0xe0   : > { %555 = vst [vmem:[%s955_s30 + $0x130] sm:$0xff] %v426_v47 }
  0xe1   : > { %556 = vst [vmem:[%s955_s30 + $0x138] sm:$0xff] %v509_v48  ;;  %v395_v49 = vpop.f32.mrf.mxu0  ;;  %v478_v50 = vpop.f32.mrf.mxu1 }
  0xe2   : > { %v396_v51 = vadd.f32 %v395_v49, %v948_v37  ;;  %v479_v52 = vadd.f32 %v478_v50, %v950_v38 }
  0xe4   : > { %535 = vst [vmem:[%s955_s30 + $0x90] sm:$0xff] %v396_v51 }
  0xe5   : > { %v428_v53 = vpop.f32.mrf.mxu2  ;;  %536 = vst [vmem:[%s955_s30 + $0x98] sm:$0xff] %v479_v52  ;;  %v511_v54 = vpop.f32.mrf.mxu3 }
  0xe6   : > { %v429_v55 = vadd.f32 %v428_v53, %v948_v37  ;;  %v512_v56 = vadd.f32 %v511_v54, %v950_v38 }
  0xe8   : > { %557 = vst [vmem:[%s955_s30 + $0x140] sm:$0xff] %v429_v55 }
  0xe9   : > { %558 = vst [vmem:[%s955_s30 + $0x148] sm:$0xff] %v512_v56  ;;  %v398_v57 = vpop.f32.mrf.mxu0  ;;  %v481_v58 = vpop.f32.mrf.mxu1 }
  0xea   : > { %v399_v59 = vadd.f32 %v398_v57, %v948_v37  ;;  %v482_v60 = vadd.f32 %v481_v58, %v950_v38 }
  0xec   : > { %537 = vst [vmem:[%s955_s30 + $0xa0] sm:$0xff] %v399_v59 }
  0xed   : > { %v431_v61 = vpop.f32.mrf.mxu2  ;;  %538 = vst [vmem:[%s955_s30 + $0xa8] sm:$0xff] %v482_v60  ;;  %v514_v62 = vpop.f32.mrf.mxu3 }
  0xee   : > { %v432_v63 = vadd.f32 %v431_v61, %v948_v37  ;;  %v515_v0 = vadd.f32 %v514_v62, %v950_v38 }
  0xf0   : > { %559 = vst [vmem:[%s955_s30 + $0x150] sm:$0x1] %v432_v63 }
  0xf1   : > { %560 = vst [vmem:[%s955_s30 + $0x158] sm:$0x1] %v515_v0 }
  0xf2 PF: > { %s13_s14 = sadd.s32 1, %s788_s14   ;;  %s1058_s12 = smov %s784_s13 }
  0xf3   : > { %p10_p5 = scmp.ge.s32.totalorder %s13_s14, 4   ;;  %s1059_s13 = smov %s1061_s15 }
  0xf5   :  { %12 = sbr.rel (!%p10_p5) target bundleno = 2 (0x2), region = 68 }

</bundles_post_ra>
